<compile_context>
chip_gen: v7x
topology: tpu7x:2x2x1
jax: 0.10.0
libtpu: 0.0.40
codegen_flags: <defaults>
</compile_context>

<pallas_src>
import functools

import jax
import jax.numpy as jnp
from jax.experimental import pallas as pl
from jax.experimental.pallas import tpu as pltpu


def _round_up(x, m):
    return (x + m - 1) // m * m


def _policy_sample_kernel(obs_ref, eps_ref, wb1_ref, wb2_ref, wbh_ref, out_ref,
                          *, obs_dim, hidden, act_dim, obs_dim_p, hidden_p, head_half):
    """One batch tile: fused MLP encoder + fused (loc|log_scale) head + reparam sample."""
    obs = obs_ref[...]

    # Layer 1: weight rows [0, obs_dim), bias on sublane-aligned row obs_dim_p.
    w1 = wb1_ref[:obs_dim, :]
    b1 = wb1_ref[obs_dim_p:obs_dim_p + 1, :].astype(jnp.float32)
    h = jnp.dot(obs.astype(w1.dtype), w1, preferred_element_type=jnp.float32) + b1
    h = jnp.maximum(h, 0.0)

    # Layer 2.
    w2 = wb2_ref[:hidden, :]
    b2 = wb2_ref[hidden_p:hidden_p + 1, :].astype(jnp.float32)
    h = jnp.dot(h.astype(w2.dtype), w2, preferred_element_type=jnp.float32) + b2
    h = jnp.maximum(h, 0.0)

    # Fused heads: one matmul produces [loc | log_scale], each half padded to a
    # multiple of 128 lanes so the split below sits on a lane-tile boundary.
    wh = wbh_ref[:hidden, :]
    bh = wbh_ref[hidden_p:hidden_p + 1, :].astype(jnp.float32)
    y = jnp.dot(h.astype(wh.dtype), wh, preferred_element_type=jnp.float32) + bh

    loc = y[:, :act_dim]
    log_scale = jnp.clip(y[:, head_half:head_half + act_dim], -20.0, 2.0)
    scale = jnp.exp(log_scale)

    # Reparameterized sample, tanh squash into [-1, 1].
    out_ref[...] = jnp.tanh(loc + scale * eps_ref[...].astype(jnp.float32))


def pack_params(params, *, compute_dtype=jnp.float32):
    """Pack policy parameters ONCE (call when weights change, not per sampling step).

    Per layer, rows [0, K) hold the weight and the bias sits on the first
    multiple-of-8 row >= K (aligned split points). The two head matrices are
    fused side by side with each half padded to a multiple of 128 lanes.
    Re-packing per call would add a full HBM pass over the weights per launch.
    """
    w1, b1, w2, b2, wl, bl, ws, bs = params
    obs_dim, hidden = w1.shape
    act_dim = wl.shape[1]
    obs_dim_p = _round_up(obs_dim, 8)
    hidden_p = _round_up(hidden, 8)
    head_half = _round_up(act_dim, 128)

    def pack(w, b, k_p):
        k, n = w.shape
        out = jnp.zeros((k_p + 8, n), jnp.float32)
        out = out.at[:k, :].set(w)
        out = out.at[k_p, :].set(b.reshape(-1))
        # TODO(synk): in bf16 mode the bias row is also rounded to bf16; split biases into a
        # separate f32 input if that precision matters.
        return out.astype(compute_dtype)

    wb1 = pack(w1, b1, obs_dim_p)                              # (obs_dim_p+8, hidden)
    wb2 = pack(w2, b2, hidden_p)                               # (hidden_p+8,  hidden)

    wh = jnp.zeros((hidden, 2 * head_half), jnp.float32)
    wh = wh.at[:, :act_dim].set(wl)
    wh = wh.at[:, head_half:head_half + act_dim].set(ws)
    bh = jnp.zeros((2 * head_half,), jnp.float32)
    bh = bh.at[:act_dim].set(bl.reshape(-1))
    bh = bh.at[head_half:head_half + act_dim].set(bs.reshape(-1))
    wbh = pack(wh, bh, hidden_p)                               # (hidden_p+8, 2*head_half)

    return wb1, wb2, wbh


def stochastic_policy_action(obs, eps, packed_params, *, block_batch=1024,
                             stream_buffers=2):
    """Sampled (tanh-squashed) action, shape [batch, act_dim].

    obs: (batch, obs_dim); eps: (batch, act_dim) ~ N(0, I);
    packed_params: output of pack_params().  For the bf16 path, pass bf16 obs
    and pack with compute_dtype=jnp.bfloat16 (accumulation stays f32 in-kernel).
    """
    wb1, wb2, wbh = packed_params
    batch, obs_dim = obs.shape
    act_dim = eps.shape[1]
    hidden = wb1.shape[1]
    obs_dim_p = wb1.shape[0] - 8
    hidden_p = wb2.shape[0] - 8
    head_half = wbh.shape[1] // 2
    assert block_batch % 8 == 0, "block_batch must be a multiple of 8"

    # Batch tiling. No wrapper-side padding: Pallas masks the ragged final block, so
    # obs/eps are streamed from HBM exactly once. Aim for >= 2 grid steps so
    # dimension_semantics=("parallel",) can use v7x's second TensorCore.
    if batch <= 8:
        tb = batch                                              # block == full dim
    else:
        tb = min(block_batch, _round_up(pl.cdiv(batch, 2), 8))  # multiple of 8
    grid = (pl.cdiv(batch, tb),)

    # VMEM budget: resident weights (single-buffered) + pipelined obs/eps/out tiles.
    # Clamp to [32 MiB, 64 MiB]: valid on every generation (v7x: 64 MiB physical;
    # v5e's scoped default of 16 MiB would otherwise reject large tiles).
    weight_bytes = sum(int(x.size) * x.dtype.itemsize for x in (wb1, wb2, wbh))
    stream_bytes = tb * (obs.dtype.itemsize * obs_dim
                         + eps.dtype.itemsize * act_dim + 4 * act_dim)
    vmem_bytes = weight_bytes + (stream_buffers + 1) * stream_bytes + (2 << 20)
    vmem_limit = int(min(64 << 20, max(32 << 20, vmem_bytes)))

    kernel = functools.partial(
        _policy_sample_kernel, obs_dim=obs_dim, hidden=hidden, act_dim=act_dim,
        obs_dim_p=obs_dim_p, hidden_p=hidden_p, head_half=head_half)

    stream_mode = None if stream_buffers == 2 else pl.Buffered(stream_buffers)
    resident = pl.Buffered(1)   # constant index_map -> keep a single VMEM copy of the weights

    return pl.pallas_call(
        kernel,
        out_shape=jax.ShapeDtypeStruct((batch, act_dim), jnp.float32),
        grid=grid,
        in_specs=[
            pl.BlockSpec((tb, obs_dim), lambda i: (i, 0), pipeline_mode=stream_mode),
            pl.BlockSpec((tb, act_dim), lambda i: (i, 0), pipeline_mode=stream_mode),
            pl.BlockSpec(wb1.shape, lambda i: (0, 0), pipeline_mode=resident),
            pl.BlockSpec(wb2.shape, lambda i: (0, 0), pipeline_mode=resident),
            pl.BlockSpec(wbh.shape, lambda i: (0, 0), pipeline_mode=resident),
        ],
        out_specs=pl.BlockSpec((tb, act_dim), lambda i: (i, 0)),
        compiler_params=pltpu.CompilerParams(
            dimension_semantics=("parallel",),      # shard batch blocks on v7x's 2 TCs
            vmem_limit_bytes=vmem_limit,
        ),
    )(obs, eps, wb1, wb2, wbh)


def init_params(key, obs_dim, hidden, act_dim):
    """Deterministic synthetic parameter init (small-scale normal weights)."""
    ks = jax.random.split(key, 4)
    scale = 0.1
    w1 = scale * jax.random.normal(ks[0], (obs_dim, hidden), jnp.float32)
    b1 = jnp.zeros((1, hidden), jnp.float32)
    w2 = scale * jax.random.normal(ks[1], (hidden, hidden), jnp.float32)
    b2 = jnp.zeros((1, hidden), jnp.float32)
    wl = scale * jax.random.normal(ks[2], (hidden, act_dim), jnp.float32)
    bl = jnp.zeros((1, act_dim), jnp.float32)
    ws = scale * jax.random.normal(ks[3], (hidden, act_dim), jnp.float32)
    bs = jnp.zeros((1, act_dim), jnp.float32)
    return (w1, b1, w2, b2, wl, bl, ws, bs)


def reference(obs, eps, params):
    """Pure-JAX reference of the same forward pass."""
    (w1, b1, w2, b2, wl, bl, ws, bs) = params
    h = jnp.maximum(obs @ w1 + b1, 0.0)
    h = jnp.maximum(h @ w2 + b2, 0.0)
    loc = h @ wl + bl
    log_scale = jnp.clip(h @ ws + bs, -20.0, 2.0)
    return jnp.tanh(loc + jnp.exp(log_scale) * eps)


if __name__ == "__main__":
    key = jax.random.PRNGKey(0)
    k_obs, k_eps, k_par = jax.random.split(key, 3)

    obs_dim, hidden, act_dim = 16, 32, 4
    params = init_params(k_par, obs_dim, hidden, act_dim)
    packed = pack_params(params)                 # hoisted: pack once, reuse every call
    packed = jax.block_until_ready(packed)

    # Even batch (two full blocks) and a ragged batch (masked final block, no wrapper-side
    # padding) run through the same kernel. Garbage rows in the ragged block never reach HBM
    # (the partial-block writeback is clipped) and valid rows match the reference.
    for batch in (64, 50):
        obs = jax.random.normal(k_obs, (batch, obs_dim), jnp.float32)
        eps = jax.random.normal(k_eps, (batch, act_dim), jnp.float32)
        action = stochastic_policy_action(obs, eps, packed)
        action = jax.block_until_ready(action)

        ref = reference(obs, eps, params)
        assert action.shape == (batch, act_dim)
        assert jnp.allclose(action, ref, atol=1e-5, rtol=1e-5), f"mismatch at batch={batch}"

    print("KERNEL_OK")
</pallas_src>

<mosaic_0001>
module attributes {stable_mosaic.version = 11 : i64} {
  func.func @_policy_sample_kernel(%arg0: i32, %arg1: memref<32x16xf32, #tpu.memory_space<vmem>>, %arg2: memref<32x4xf32, #tpu.memory_space<vmem>>, %arg3: memref<24x32xf32, #tpu.memory_space<vmem>>, %arg4: memref<40x32xf32, #tpu.memory_space<vmem>>, %arg5: memref<40x256xf32, #tpu.memory_space<vmem>>, %arg6: memref<32x4xf32, #tpu.memory_space<vmem>>) attributes {dimension_semantics = [#tpu.dimension_semantics<parallel>], iteration_bounds = array<i64: 2>, scalar_prefetch = 0 : i64, scratch_operands = 0 : i64, tpu.core_type = #tpu.core_type<tc>, window_params = [{transform_indices = @transform_0, window_bounds = array<i64: 32, 16>}, {transform_indices = @transform_1, window_bounds = array<i64: 32, 4>}, {pipeline_mode = #tpu.pipeline_mode<synchronous>, transform_indices = @transform_2, window_bounds = array<i64: 24, 32>}, {pipeline_mode = #tpu.pipeline_mode<synchronous>, transform_indices = @transform_3, window_bounds = array<i64: 40, 32>}, {pipeline_mode = #tpu.pipeline_mode<synchronous>, transform_indices = @transform_4, window_bounds = array<i64: 40, 256>}, {transform_indices = @transform_5, window_bounds = array<i64: 32, 4>}]} {
    %c0 = arith.constant 0 : index
    %c0_0 = arith.constant 0 : index
    %0 = vector.load %arg1[%c0, %c0_0] : memref<32x16xf32, #tpu.memory_space<vmem>>, vector<32x16xf32>
    %c0_1 = arith.constant 0 : index
    %c0_2 = arith.constant 0 : index
    %1 = vector.load %arg3[%c0_1, %c0_2] : memref<24x32xf32, #tpu.memory_space<vmem>>, vector<16x32xf32>
    %c16 = arith.constant 16 : index
    %c0_3 = arith.constant 0 : index
    %2 = vector.load %arg3[%c16, %c0_3] : memref<24x32xf32, #tpu.memory_space<vmem>>, vector<1x32xf32>
    %cst = arith.constant dense<0.000000e+00> : vector<32x32xf32>
    %3 = tpu.matmul %0, %1, %cst {dimension_numbers = #tpu.dot_dimension_numbers<[1], [0], [0], [1], [0, 0, 1, 1], [], []>} : vector<32x16xf32>, vector<16x32xf32>, vector<32x32xf32> -> vector<32x32xf32>
    %4 = vector.broadcast %2 : vector<1x32xf32> to vector<32x32xf32>
    %5 = arith.addf %3, %4 : vector<32x32xf32>
    %cst_4 = arith.constant 0.000000e+00 : f32
    %6 = vector.broadcast %cst_4 : f32 to vector<32x32xf32>
    %7 = arith.maximumf %5, %6 : vector<32x32xf32>
    %c0_5 = arith.constant 0 : index
    %c0_6 = arith.constant 0 : index
    %8 = vector.load %arg4[%c0_5, %c0_6] : memref<40x32xf32, #tpu.memory_space<vmem>>, vector<32x32xf32>
    %c32 = arith.constant 32 : index
    %c0_7 = arith.constant 0 : index
    %9 = vector.load %arg4[%c32, %c0_7] : memref<40x32xf32, #tpu.memory_space<vmem>>, vector<1x32xf32>
    %cst_8 = arith.constant dense<0.000000e+00> : vector<32x32xf32>
    %10 = tpu.matmul %7, %8, %cst_8 {dimension_numbers = #tpu.dot_dimension_numbers<[1], [0], [0], [1], [0, 0, 1, 1], [], []>} : vector<32x32xf32>, vector<32x32xf32>, vector<32x32xf32> -> vector<32x32xf32>
    %11 = vector.broadcast %9 : vector<1x32xf32> to vector<32x32xf32>
    %12 = arith.addf %10, %11 : vector<32x32xf32>
    %cst_9 = arith.constant 0.000000e+00 : f32
    %13 = vector.broadcast %cst_9 : f32 to vector<32x32xf32>
    %14 = arith.maximumf %12, %13 : vector<32x32xf32>
    %c0_10 = arith.constant 0 : index
    %c0_11 = arith.constant 0 : index
    %15 = vector.load %arg5[%c0_10, %c0_11] : memref<40x256xf32, #tpu.memory_space<vmem>>, vector<32x256xf32>
    %c32_12 = arith.constant 32 : index
    %c0_13 = arith.constant 0 : index
    %16 = vector.load %arg5[%c32_12, %c0_13] : memref<40x256xf32, #tpu.memory_space<vmem>>, vector<1x256xf32>
    %cst_14 = arith.constant dense<0.000000e+00> : vector<32x256xf32>
    %17 = tpu.matmul %14, %15, %cst_14 {dimension_numbers = #tpu.dot_dimension_numbers<[1], [0], [0], [1], [0, 0, 1, 1], [], []>} : vector<32x32xf32>, vector<32x256xf32>, vector<32x256xf32> -> vector<32x256xf32>
    %18 = vector.broadcast %16 : vector<1x256xf32> to vector<32x256xf32>
    %19 = arith.addf %17, %18 : vector<32x256xf32>
    %20 = vector.extract_strided_slice %19 {offsets = [0, 0], sizes = [32, 4], strides = [1, 1]} : vector<32x256xf32> to vector<32x4xf32>
    %21 = vector.extract_strided_slice %19 {offsets = [0, 128], sizes = [32, 4], strides = [1, 1]} : vector<32x256xf32> to vector<32x4xf32>
    %cst_15 = arith.constant -2.000000e+01 : f32
    %cst_16 = arith.constant 2.000000e+00 : f32
    %22 = vector.broadcast %cst_15 : f32 to vector<32x4xf32>
    %23 = arith.maximumf %22, %21 : vector<32x4xf32>
    %24 = vector.broadcast %cst_16 : f32 to vector<32x4xf32>
    %25 = arith.minimumf %24, %23 : vector<32x4xf32>
    %26 = math.exp %25 : vector<32x4xf32>
    %c0_17 = arith.constant 0 : index
    %c0_18 = arith.constant 0 : index
    %27 = vector.load %arg2[%c0_17, %c0_18] : memref<32x4xf32, #tpu.memory_space<vmem>>, vector<32x4xf32>
    %28 = arith.mulf %26, %27 : vector<32x4xf32>
    %29 = arith.addf %20, %28 : vector<32x4xf32>
    %30 = math.tanh %29 : vector<32x4xf32>
    %c0_19 = arith.constant 0 : index
    %c0_20 = arith.constant 0 : index
    %31 = vector.load %arg6[%c0_19, %c0_20] : memref<32x4xf32, #tpu.memory_space<vmem>>, vector<32x4xf32>
    tpu.vector_store %arg6[%c0_19, %c0_20], %30 {strides = array<i32>} : memref<32x4xf32, #tpu.memory_space<vmem>>, vector<32x4xf32>,
    return
  }
  func.func @transform_0(%arg0: i32) -> (i32, i32) {
    %c0_i32 = arith.constant 0 : i32
    %c0_i32_0 = arith.constant 0 : i32
    return %arg0, %c0_i32 : i32, i32
  }
  func.func @transform_1(%arg0: i32) -> (i32, i32) {
    %c0_i32 = arith.constant 0 : i32
    %c0_i32_0 = arith.constant 0 : i32
    return %arg0, %c0_i32 : i32, i32
  }
  func.func @transform_2(%arg0: i32) -> (i32, i32) {
    %c0_i32 = arith.constant 0 : i32
    %c0_i32_0 = arith.constant 0 : i32
    %c0_i32_1 = arith.constant 0 : i32
    return %c0_i32, %c0_i32_0 : i32, i32
  }
  func.func @transform_3(%arg0: i32) -> (i32, i32) {
    %c0_i32 = arith.constant 0 : i32
    %c0_i32_0 = arith.constant 0 : i32
    %c0_i32_1 = arith.constant 0 : i32
    return %c0_i32, %c0_i32_0 : i32, i32
  }
  func.func @transform_4(%arg0: i32) -> (i32, i32) {
    %c0_i32 = arith.constant 0 : i32
    %c0_i32_0 = arith.constant 0 : i32
    %c0_i32_1 = arith.constant 0 : i32
    return %c0_i32, %c0_i32_0 : i32, i32
  }
  func.func @transform_5(%arg0: i32) -> (i32, i32) {
    %c0_i32 = arith.constant 0 : i32
    %c0_i32_0 = arith.constant 0 : i32
    return %arg0, %c0_i32 : i32, i32
  }
}

</mosaic_0001>

<bundles_post_ra>
// kernel: tpu_custom_call.1
= control target key start
LH: loop header
LB: loop body
LE: loop exit
PB: predicated region body
PF: predicated region fallthrough
CT: control target
= control target key end

     0   :  { %s851_s18 = smov 0   ;;  %s935_s0 = inlined_call_operand.vmem [shape: f32[64,16], index: 0, kind: input, shape index: {}]   ;;  %s936_s1 = inlined_call_operand.vmem [shape: f32[64,4], index: 1, kind: input, shape index: {}]   ;;  %s937_s2 = inlined_call_operand.vmem [shape: f32[24,32], index: 2, kind: input, shape index: {}]   ;;  %s938_s3 = inlined_call_operand.vmem [shape: f32[40,32], index: 3, kind: input, shape index: {}]   ;;  %s939_s4 = inlined_call_operand.vmem [shape: f32[40,256], index: 4, kind: input, shape index: {}]   ;;  %s940_s5 = inlined_call_operand.vmem [shape: f32[64,4], index: 5, kind: output, shape index: {}]  }
   0x1 LB: > { %s701_s19 = sadd.s32 4294967295, %s818_s18   ;;  %p705_p0 = scmp.ge.s32.totalorder %s818_s18, 1  ;;  %s818_s18 = sphi %s851_s18, %s15_s18  }
   0x2   : > { %p199_p1 = scmp.lt.s32.totalorder %s818_s18, 3 }
   0x4   : > { %p200_p2 = pnand %p705_p0, %p199_p1 }
   0x5   : > { %v254_v0 = vld [vmem:[%s937_s2] sm:$0xff] (!%p200_p2)  ;;  %v255_v1 = vld [vmem:[%s937_s2 + $0x8] sm:$0xff] (!%p200_p2)  ;;  %s706_s24 = sshll.u32 (!%p200_p2), %s701_s19, 2  ;;  %vm261_vm0 = vcmask (!%p200_p2), 130048   ;;  %v365_v10 = vld [vmem:[%s938_s3 + $0x10] sm:$0xff] (!%p200_p2)  ;;  %vm372_vm1 = vcmask (!%p200_p2), 261120   ;;  %v485_v52 = vlaneseq (!%p200_p2) }
   0x6   : > { %203 = sbr.rel (%p200_p2) target bundleno = 713 (0x2c9), region = 40  ;;  %v363_v2 = vld [vmem:[%s938_s3] sm:$0xff] (!%p200_p2)  ;;  %v767_v3 = vpack.c.bf16 (!%p200_p2), %v255_v1, %v254_v0  ;;  %p233_p3 = scmp.lt.s32.totalorder (!%p200_p2), %s706_s24, 7  ;;  %v364_v4 = vld [vmem:[%s938_s3 + $0x8] sm:$0xff] (!%p200_p2)  ;;  %v366_v11 = vld [vmem:[%s938_s3 + $0x18] sm:$0xff] (!%p200_p2)  ;;  %v820_v38 = vmov (!%p200_p2), 0.0  }
   0x7   : > { %v771_v5 = vpack.c.bf16 (!%p200_p2), %v364_v4, %v363_v2  ;;  %v775_v12 = vpack.c.bf16 (!%p200_p2), %v366_v11, %v365_v10  ;;  %v475_v13 = vld [vmem:[%s939_s4 + $0x8] sm:$0xff] (!%p200_p2)  ;;  %v477_v14 = vld [vmem:[%s939_s4 + $0x18] sm:$0xff] (!%p200_p2)  ;;  %v474_v15 = vld [vmem:[%s939_s4] sm:$0xff] (!%p200_p2)  ;;  %571 = vmatprep.mubr.f32.mxu0 (!%p200_p2), %v820_v38  ;;  %v486_v53 = vshrl.u32 (!%p200_p2), %v485_v52, 7  ;;  %vm628_vm2 = vcmask (!%p200_p2), 31744  }
   0x8   : > { %768 = vmatprep.subr.bf16.mxu1 (!%p200_p2), %v767_v3  ;;  %v779_v16 = vpack.c.bf16 (!%p200_p2), %v477_v14, %v475_v13  ;;  %v476_v17 = vld [vmem:[%s939_s4 + $0x10] sm:$0xff] (!%p200_p2)  ;;  %v479_v32 = vld [vmem:[%s939_s4 + $0x28] sm:$0xff] (!%p200_p2)  ;;  %v481_v33 = vld [vmem:[%s939_s4 + $0x38] sm:$0xff] (!%p200_p2) }
   0x9   : > { %770 = vmatpush3.bf16.msra.mxu1 (!%p200_p2), %v767_v3  ;;  %v781_v18 = vpack.c.bf16 (!%p200_p2), %v476_v17, %v474_v15  ;;  %v712_v19 = vld [vmem:[%s937_s2 + $0x10] ss:$0 sm:$0xff] (!%p200_p2)  ;;  %v783_v34 = vpack.c.bf16 (!%p200_p2), %v481_v33, %v479_v32  ;;  %v478_v35 = vld [vmem:[%s939_s4 + $0x20] sm:$0xff] (!%p200_p2)  ;;  %v491_v54 = vsub.s32 (!%p200_p2), 1, %v486_v53  ;;  %v487_v10 = vsub.s32 (!%p200_p2), 0, %v486_v53 }
   0xa   : > { %772 = vmatprep.subr.bf16.mxu1 (!%p200_p2), %v771_v5  ;;  %780 = vmatprep.subr.bf16.mxu0 (!%p200_p2), %v779_v16  ;;  %v480_v36 = vld [vmem:[%s939_s4 + $0x30] sm:$0xff] (!%p200_p2)  ;;  %v717_v39 = vld [vmem:[%s938_s3 + $0x20] ss:$0 sm:$0xff] (!%p200_p2) }
   0xb   : > { %782 = vmatpush1.bf16.msra.mxu0 (!%p200_p2), %v781_v18  ;;  %v785_v37 = vpack.c.bf16 (!%p200_p2), %v480_v36, %v478_v35  ;;  %v722_v55 = vld [vmem:[%s939_s4 + $0x40] ss:$8 sm:$0x3] (!%p200_p2) }
   0xc   : > { %784 = vmatprep.subr.bf16.mxu0 (!%p200_p2), %v783_v34  ;;  %v492_v56 = vrot.slane (!%p200_p2), %v722_v55, %v491_v54  ;;  %v488_v16 = vrot.slane (!%p200_p2), %v722_v55, %v487_v10 }
   0xd   : > { %s942_s24 = smov (!%p233_p3, %s706_s24), 7 }
   0xe   : > { %s871_s29 = sshll.u32 %s942_s24, 3 }
   0xf   : > { %s236_s7 = scalar_lea.vmem %s935_s0, %s871_s29  ;;  %786 = vmatpush1.bf16.msra.mxu0 %v785_v37  ;;  %s242_s13 = scalar_lea.vmem %s936_s1, %s871_s29 }
  0x10   : > { %v250_v6 = vld [vmem:[%s236_s7] sm:$0xff]  ;;  %v251_v7 = vld [vmem:[%s236_s7 + $0x8] sm:$0xff]  ;;  %v252_v8 = vld [vmem:[%s236_s7 + $0x10] sm:$0xff]  ;;  %s248_s16 = scalar_lea.vmem %s940_s5, %s871_s29 }
  0x11   : > { %747 = vmatprep.mubr.msk.f32.mxu1 %vm261_vm0, %v250_v6  ;;  %v253_v9 = vld [vmem:[%s236_s7 + $0x18] sm:$0xff]  ;;  %v612_v17 = vld [vmem:[%s242_s13] sm:$0xff] }
  0x12   : > { %748 = vmatmul.mubr.msk.f32.vlgmr.msra.gmra.mrb[0].mxu1 %vm261_vm0, %v251_v7  ;;  %v615_v33 = vld [vmem:[%s242_s13 + $0x18] sm:$0xff] }
  0x13   : > { %750 = vmatprep.mubr.msk.f32.mxu1 %vm261_vm0, %v252_v8  ;;  %774 = vmatpush3.bf16.msra.mxu1 %v771_v5 }
  0x14   : > { %776 = vmatprep.subr.bf16.mxu1 %v775_v12 }
  0x16   : > { %751 = vmatmul.mubr.msk.f32.gmra.mrb[2].mxu1 %vm261_vm0, %v253_v9 }
  0x17   : > { %778 = vmatpush3.bf16.msra.mxu1 %v775_v12 }
  0xe5   : > { %v749_v20 = vpop.f32.mrb[0].mxu1 }
  0xe6   : > { %v346_v21 = vadd.f32 %v749_v20, %v712_v19  ;;  %v340_v22 = vpop.f32.mrb[1].mxu1 }
  0xe7   : > { %v341_v23 = vadd.f32 %v712_v19, %v340_v22 }
  0xe8   : > { %v360_v26 = vmax.f32 %v346_v21, 0.0 }
  0xe9   : > { %v359_v24 = vmax.f32 %v341_v23, 0.0  ;;  %v752_v25 = vpop.f32.mrb[2].mxu1  ;;  %v613_v23 = vld [vmem:[%s242_s13 + $0x8] sm:$0xff] }
  0xea   : > { %v356_v27 = vadd.f32 %v752_v25, %v712_v19  ;;  %v350_v28 = vpop.f32.mrb[3].mxu1 }
  0xeb   : > { %v351_v29 = vadd.f32 %v712_v19, %v350_v28  ;;  %761 = vmatprep.mubr.msk.f32.mxu1 %vm372_vm1, %v359_v24  ;;  %v614_v28 = vld [vmem:[%s242_s13 + $0x10] sm:$0xff] }
  0xec   : > { %v362_v30 = vmax.f32 %v356_v27, 0.0  ;;  %762 = vmatmul.mubr.msk.f32.vlgmr.msra.gmra.mrb[4].mxu1 %vm372_vm1, %v360_v26 }
  0xed   : > { %v361_v31 = vmax.f32 %v351_v29, 0.0 }
  0xef   : > { %764 = vmatprep.mubr.msk.f32.mxu1 %vm372_vm1, %v361_v31 }
  0xf0   : > { %765 = vmatmul.mubr.msk.f32.gmra.mrb[6].mxu1 %vm372_vm1, %v362_v30 }
 0x1bf   : > { %v763_v40 = vpop.f32.mrb[4].mxu1 }
 0x1c0   : > { %v451_v41 = vpop.f32.mrb[5].mxu1  ;;  %v457_v43 = vadd.f32 %v763_v40, %v717_v39 }
 0x1c1   : > { %v452_v42 = vadd.f32 %v717_v39, %v451_v41 }
 0x1c2   : > { %v471_v47 = vmax.f32 %v457_v43, 0.0 }
 0x1c3   : > { %v470_v44 = vmax.f32 %v452_v42, 0.0  ;;  %v766_v45 = vpop.f32.mrb[6].mxu1 }
 0x1c4   : > { %v461_v46 = vpop.f32.mrb[7].mxu1  ;;  %v467_v49 = vadd.f32 %v766_v45, %v717_v39 }
 0x1c5   : > { %723 = vmatmul.mubr.msk.f32.vlgmr.msra.gmra.mrb[0].mxu0 %vm372_vm1, %v470_v44  ;;  %v462_v48 = vadd.f32 %v717_v39, %v461_v46 }
 0x1c6   : > { %577 = vmatprep.mubr.f32.mxu0 %v820_v38  ;;  %v473_v51 = vmax.f32 %v467_v49, 0.0 }
 0x1c7   : > { %v472_v50 = vmax.f32 %v462_v48, 0.0 }
 0x1c9   : > { %724 = vmatmul.mubr.msk.f32.gmra.mrb[2].mxu0 %vm372_vm1, %v471_v47 }
 0x1ca   : > { %583 = vmatprep.mubr.f32.mxu0 %v820_v38 }
 0x1cd   : > { %725 = vmatmul.mubr.msk.f32.gmra.mrb[4].mxu0 %vm372_vm1, %v472_v50 }
 0x1ce   : > { %589 = vmatprep.mubr.f32.mxu0 %v820_v38 }
 0x1d1   : > { %726 = vmatmul.mubr.msk.f32.gmra.mrb[6].mxu0 %vm372_vm1, %v473_v51 }
 0x298   : > { %v573_v57 = vpop.f32.mrb[0].mxu0 }
 0x299   : > { %v575_v58 = vpop.f32.mrb[1].mxu0  ;;  %v574_v21 = vadd.f32 %v573_v57, %v488_v16 }
 0x29a   : > { %v576_v59 = vadd.f32 %v575_v58, %v492_v56 }
 0x29c   : > { %v596_v60 = vmax.f32 %v576_v59, -20.0  ;;  %v579_v61 = vpop.f32.mrb[2].mxu0 }
 0x29d   : > { %v581_v62 = vpop.f32.mrb[3].mxu0  ;;  %v580_v26 = vadd.f32 %v579_v61, %v488_v16 }
 0x29e   : > { %v600_v63 = vmin.f32 %v596_v60, 2.0  ;;  %v582_v0 = vadd.f32 %v581_v62, %v492_v56 }
 0x2a0   : > { %v604_v1 = vmul.f32 1.442695, %v600_v63  ;;  %v597_v2 = vmax.f32 %v582_v0, -20.0  ;;  %v585_v3 = vpop.f32.mrb[4].mxu0 }
 0x2a1   : > { %v587_v4 = vpop.f32.mrb[5].mxu0  ;;  %v586_v31 = vadd.f32 %v585_v3, %v488_v16 }
 0x2a2   : > { %796 = vpow2.f32 %v604_v1  ;;  %v601_v5 = vmin.f32 %v597_v2, 2.0  ;;  %v588_v6 = vadd.f32 %v587_v4, %v492_v56 }
 0x2a4   : > { %v606_v7 = vmul.f32 1.442695, %v601_v5  ;;  %v598_v8 = vmax.f32 %v588_v6, -20.0  ;;  %v591_v9 = vpop.f32.mrb[6].mxu0 }
 0x2a5   : > { %v593_v11 = vpop.f32.mrb[7].mxu0  ;;  %v592_v36 = vadd.f32 %v591_v9, %v488_v16 }
 0x2a6   : > { %798 = vpow2.f32 %v606_v7  ;;  %v602_v12 = vmin.f32 %v598_v8, 2.0  ;;  %v594_v13 = vadd.f32 %v593_v11, %v492_v56 }
 0x2a8   : > { %v608_v14 = vmul.f32 1.442695, %v602_v12  ;;  %v599_v15 = vmax.f32 %v594_v13, -20.0 }
 0x2aa   : > { %800 = vpow2.f32 %v608_v14  ;;  %v603_v18 = vmin.f32 %v599_v15, 2.0 }
 0x2ac   : > { %v797_v19 = vpop.eup %796  ;;  %v610_v20 = vmul.f32 1.442695, %v603_v18 }
 0x2ad   : > { %v616_v22 = vmul.f32 %v797_v19, %v612_v17 }
 0x2ae   : > { %802 = vpow2.f32 %v610_v20 }
 0x2af   : > { %v620_v24 = vadd.f32 %v616_v22, %v574_v21 }
 0x2b0   : > { %v799_v25 = vpop.eup %798 }
 0x2b1   : > { %804 = vtanh.f32 %v620_v24  ;;  %v617_v27 = vmul.f32 %v799_v25, %v613_v23 }
 0x2b3   : > { %v621_v29 = vadd.f32 %v617_v27, %v580_v26 }
 0x2b4   : > { %v801_v30 = vpop.eup %800 }
 0x2b5   : > { %806 = vtanh.f32 %v621_v29  ;;  %v618_v32 = vmul.f32 %v801_v30, %v614_v28 }
 0x2b7   : > { %v622_v34 = vadd.f32 %v618_v32, %v586_v31 }
 0x2b8   : > { %v803_v35 = vpop.eup %802 }
 0x2b9   : > { %808 = vtanh.f32 %v622_v34  ;;  %v619_v37 = vmul.f32 %v803_v35, %v615_v33 }
 0x2bb   : > { %v805_v38 = vpop.eup %804  ;;  %v623_v39 = vadd.f32 %v619_v37, %v592_v36 }
 0x2bc   : > { %629 = vst.msk [vmem:[%s248_s16] sm:$0xff] %vm628_vm2, %v805_v38 }
 0x2bd   : > { %810 = vtanh.f32 %v623_v39 }
 0x2bf   : > { %v807_v40 = vpop.eup %806 }
 0x2c0   : > { %630 = vst.msk [vmem:[%s248_s16 + $0x8] sm:$0xff] %vm628_vm2, %v807_v40 }
 0x2c3   : > { %v809_v41 = vpop.eup %808 }
 0x2c4   : > { %631 = vst.msk [vmem:[%s248_s16 + $0x10] sm:$0xff] %vm628_vm2, %v809_v41 }
 0x2c7   : > { %v811_v42 = vpop.eup %810 }
 0x2c8   : > { %632 = vst.msk [vmem:[%s248_s16 + $0x18] sm:$0xff] %vm628_vm2, %v811_v42 }
 0x2c9 PF: > { %s15_s18 = sadd.s32 1, %s818_s18  }
 0x2ca   : > { %p12_p4 = scmp.ge.s32.totalorder %s15_s18, 4  }
 0x2cc   :  { %14 = sbr.rel (!%p12_p4) target bundleno = 1 (0x1), region = 74 }

</bundles_post_ra>
